<compile_context>
chip_gen: v5e
topology: v5e:2x2
jax: 0.10.0
libtpu: 0.0.40
codegen_flags: <defaults>
</compile_context>

<pallas_src>
import jax
import jax.numpy as jnp
from jax.experimental import pallas as pl
from jax.experimental.pallas import tpu as pltpu


_LANE = 128
_VMEM_LIMIT_BYTES = 32 * 1024 * 1024      # explicit budget; safe on v5e/v6e/v7x
_TARGET_BLOCK_BYTES = 4 * 1024 * 1024     # ~4 MiB tiles -> ~16 MiB pipelined VMEM


def _make_nonneg_kernel(bound: float, pedestal: float):
    """Elementwise kernel: out = max(x, bound)**2 - pedestal (f32 compute)."""

    def kernel(x_ref, o_ref):
        x = x_ref[...].astype(jnp.float32)
        y = jnp.maximum(x, bound)            # bound / pedestal: weak f32 consts
        o_ref[...] = (y * y - pedestal).astype(o_ref.dtype)

    return kernel


def _jnp_forward(x, bound, pedestal):
    """Plain-jnp path (tiny inputs / ragged tails); fuses into one XLA op."""
    y = jnp.maximum(x.astype(jnp.float32), bound)
    return (y * y - pedestal).astype(x.dtype)


def _sublane_multiple(dtype) -> int:
    """Row-tile alignment: 8 for 4-byte, 16 for 2-byte, 32 for 1-byte dtypes."""
    itemsize = jnp.dtype(dtype).itemsize
    return max(8, 32 // max(itemsize, 1))


def _choose_lane_width(n_elems: int) -> int:
    """Widest lane width (multiple of 128) dividing n, preferring >= 8 rows."""
    for lane in (2048, 1024, 512, 256, 128):
        if n_elems % lane == 0 and n_elems // lane >= 8:
            return lane
    for lane in (2048, 1024, 512, 256, 128):
        if n_elems % lane == 0:
            return lane
    return _LANE  # unreachable: n_elems is a multiple of 128


def _plan_row_tile(rows: int, lane: int, itemsize: int, sub: int):
    """Pick (tr, grid): ~4 MiB blocks; grid never 1 for non-trivial slabs."""
    slab_bytes = rows * lane * itemsize
    tr = max(sub, (_TARGET_BLOCK_BYTES // (lane * itemsize)) // sub * sub)

    # Keep the pipeline + v7x 2-TC sharding engaged: >= 8 blocks for >= 2 MiB
    # slabs, >= 4 for >= 1 MiB, >= 2 for >= 256 KiB (subject to sublane
    # alignment); tiny slabs stay as one full-extent block (overhead wins).
    if slab_bytes >= (2 << 20):
        min_grid = 8
    elif slab_bytes >= (1 << 20):
        min_grid = 4
    elif slab_bytes >= (256 << 10):
        min_grid = 2
    else:
        min_grid = 1
    if min_grid > 1 and rows > sub:
        cap = max(sub, (rows // min_grid) // sub * sub)
        tr = min(tr, cap)

    if tr >= rows:
        return rows, 1           # single full-extent block (legal regardless)

    grid = pl.cdiv(rows, tr)
    # Prefer an even block count so v7x's two TensorCores stay balanced.
    if grid % 2 == 1:
        for cand in (tr - sub, tr + sub):
            if sub <= cand < rows:
                g = pl.cdiv(rows, cand)
                if g > 1 and g % 2 == 0:
                    tr, grid = cand, g
                    break
    return tr, grid


def _run_tiled(flat_main, bound, pedestal, donate_input):
    """Run the Pallas kernel over a 128-aligned 1-D slab; returns 1-D output."""
    n_main = flat_main.shape[0]
    lane = _choose_lane_width(n_main)
    rows = n_main // lane
    x2d = flat_main.reshape(rows, lane)      # row-major reshape: layout only

    itemsize = jnp.dtype(flat_main.dtype).itemsize
    sub = _sublane_multiple(flat_main.dtype)
    tr, grid = _plan_row_tile(rows, lane, itemsize, sub)

    out2d = pl.pallas_call(
        _make_nonneg_kernel(bound, pedestal),
        out_shape=jax.ShapeDtypeStruct((rows, lane), flat_main.dtype),
        grid_spec=pltpu.PrefetchScalarGridSpec(
            num_scalar_prefetch=0,
            grid=(grid,),
            # Default double-buffering; deepen via pipeline_mode=pl.Buffered(3)
            # only if an xprof trace shows exposed DMA at this tile size.
            in_specs=[pl.BlockSpec((tr, lane), lambda i: (i, 0))],
            out_specs=pl.BlockSpec((tr, lane), lambda i: (i, 0)),
        ),
        compiler_params=pltpu.CompilerParams(
            dimension_semantics=("parallel",),
            vmem_limit_bytes=_VMEM_LIMIT_BYTES,
        ),
        # Alias only when the caller actually donates the input buffer;
        # otherwise XLA would add a defensive copy (an extra HBM pass).
        input_output_aliases={0: 0} if donate_input else {},
    )(x2d)
    return out2d.reshape(-1)


def nonnegative_parametrizer_forward(
    x: jax.Array,
    minimum: float = 0.0,
    reparam_offset: float = 2.0 ** (-18),
    *,
    donate_input: bool = False,
) -> jax.Array:
    """Pallas TPU implementation of NonNegativeParametrizer.forward."""
    pedestal = float(reparam_offset) ** 2
    bound = (float(minimum) + pedestal) ** 0.5

    orig_shape = x.shape
    n = x.size
    if n == 0:
        return x

    flat = x.reshape(-1)
    n_main = (n // _LANE) * _LANE

    if n_main == 0:
        # Fewer than 128 elements: one fused XLA elementwise op beats any
        # pallas_call (fixed launch + DMA overhead).
        return _jnp_forward(flat, bound, pedestal).reshape(orig_shape)

    main = flat if n_main == n else flat[:n_main]
    out_main = _run_tiled(main, bound, pedestal, donate_input)
    if n_main == n:
        return out_main.reshape(orig_shape)

    # <128-element ragged tail: plain jnp instead of the old pad-then-slice
    # path (removes two full-size HBM passes over the main body).
    tail = _jnp_forward(flat[n_main:], bound, pedestal)
    return jnp.concatenate([out_main, tail]).reshape(orig_shape)


def _reference_forward(x, minimum=0.0, reparam_offset=2.0 ** (-18)):
    pedestal = reparam_offset ** 2
    bound = (minimum + pedestal) ** 0.5
    y = jnp.maximum(x.astype(jnp.float32), bound)
    return (y * y - pedestal).astype(x.dtype)


if __name__ == "__main__":
    key = jax.random.PRNGKey(0)

    # Main path: small NCHW input, element count a multiple of 128.
    x = jax.random.normal(key, (2, 4, 16, 16), dtype=jnp.float32)
    out = jax.block_until_ready(nonnegative_parametrizer_forward(x))
    ref = _reference_forward(x)
    assert out.shape == x.shape and out.dtype == x.dtype
    assert jnp.allclose(out, ref, atol=1e-6, rtol=1e-6), "mismatch vs reference"

    # Misaligned element count: aligned-prefix Pallas kernel + fused jnp tail.
    x_odd = jax.random.normal(jax.random.PRNGKey(1), (3, 5, 7, 9), dtype=jnp.float32)
    out_odd = jax.block_until_ready(nonnegative_parametrizer_forward(x_odd))
    ref_odd = _reference_forward(x_odd)
    assert out_odd.shape == x_odd.shape
    assert jnp.allclose(out_odd, ref_odd, atol=1e-6, rtol=1e-6), "mismatch (odd)"

    # Mid-size input exercises the multi-block pipelined / parallel grid path.
    x_mid = jax.random.normal(jax.random.PRNGKey(2), (2, 32, 64, 64),
                              dtype=jnp.float32)
    out_mid = jax.block_until_ready(nonnegative_parametrizer_forward(x_mid))
    ref_mid = _reference_forward(x_mid)
    assert jnp.allclose(out_mid, ref_mid, atol=1e-6, rtol=1e-6), "mismatch (mid)"

    print("KERNEL_OK")
</pallas_src>

<mosaic_0001>
module attributes {stable_mosaic.version = 11 : i64} {
  func.func @kernel(%arg0: i32, %arg1: memref<8x256xf32, #tpu.memory_space<vmem>>, %arg2: memref<8x256xf32, #tpu.memory_space<vmem>>) attributes {dimension_semantics = [#tpu.dimension_semantics<parallel>], iteration_bounds = array<i64: 1>, scalar_prefetch = 0 : i64, scratch_operands = 0 : i64, tpu.core_type = #tpu.core_type<tc>, window_params = [{transform_indices = @transform_0, window_bounds = array<i64: 8, 256>}, {transform_indices = @transform_1, window_bounds = array<i64: 8, 256>}]} {
    %c0 = arith.constant 0 : index
    %c0_0 = arith.constant 0 : index
    %0 = vector.load %arg1[%c0, %c0_0] : memref<8x256xf32, #tpu.memory_space<vmem>>, vector<8x256xf32>
    %cst = arith.constant 3.81469727E-6 : f32
    %1 = vector.broadcast %cst : f32 to vector<8x256xf32>
    %2 = arith.maximumf %0, %1 : vector<8x256xf32>
    %3 = arith.mulf %2, %2 : vector<8x256xf32>
    %cst_1 = arith.constant 1.45519152E-11 : f32
    %4 = vector.broadcast %cst_1 : f32 to vector<8x256xf32>
    %5 = arith.subf %3, %4 : vector<8x256xf32>
    %c0_2 = arith.constant 0 : index
    %c0_3 = arith.constant 0 : index
    %6 = vector.load %arg2[%c0_2, %c0_3] : memref<8x256xf32, #tpu.memory_space<vmem>>, vector<8x256xf32>
    tpu.vector_store %arg2[%c0_2, %c0_3], %5 {strides = array<i32>} : memref<8x256xf32, #tpu.memory_space<vmem>>, vector<8x256xf32>,
    return
  }
  func.func @transform_0(%arg0: i32) -> (i32, i32) {
    %c0_i32 = arith.constant 0 : i32
    %c0_i32_0 = arith.constant 0 : i32
    return %arg0, %c0_i32 : i32, i32
  }
  func.func @transform_1(%arg0: i32) -> (i32, i32) {
    %c0_i32 = arith.constant 0 : i32
    %c0_i32_0 = arith.constant 0 : i32
    return %arg0, %c0_i32 : i32, i32
  }
}

</mosaic_0001>

<bundles_post_ra>
// kernel: tpu_custom_call.1
= control target key start
LH: loop header
LB: loop body
LE: loop exit
PB: predicated region body
PF: predicated region fallthrough
CT: control target
= control target key end

     0   :  { %6 = vsyncpa [#allocation3], 0  ;;  %s124_s0 = inlined_call_operand.hbm [shape: f32[8,256], index: 0, kind: input, shape index: {}]   ;;  %s125_s1 = inlined_call_operand.hbm [shape: f32[8,256], index: 1, kind: output, shape index: {}]  }
   0x1   :  { %7 = vsyncpa [#allocation4], 0  ;;  %s13_s8 = sshll.u32 %s124_s0, 4  ;;  %s106_s9 = smov [#allocation2]   ;;  %s14_s8 = int_to_ptr.hbm [resolvable:$true] %s13_s8 }
   0x2   :  { %s15_s10 = sshll.u32 %s106_s9, 4  ;;  %s16_s10 = int_to_ptr.vmem [resolvable:$true] %s15_s10 }
   0x3   :  { %18 = dma.hbm_to_vmem [thread:$0]  %s14_s8, 256, %s16_s10, [#allocation3]  }
   0x4   :  { %102 = dma.done.wait [#allocation3], 256  }
   0x5   :  { %103 = vsyncadd [#allocation3], 4294967040  ;;  %v23_v0 = vld [vmem:[#allocation2] sm:$0xff]  ;;  %v24_v1 = vld [vmem:[#allocation2 + $0x8] sm:$0xff]  ;;  %s107_s11 = smov [#allocation5]   ;;  %s40_s15 = sshll.u32 %s125_s1, 4  ;;  %s41_s15 = int_to_ptr.hbm [resolvable:$true] %s40_s15 }
   0x6   :  { %v25_v2 = vmax.f32 %v23_v0, 3.8146973e-06  ;;  %v26_v3 = vmax.f32 %v24_v1, 3.8146973e-06  ;;  %s38_s12 = sshll.u32 %s107_s11, 4  ;;  %s39_s12 = int_to_ptr.vmem [resolvable:$true] %s38_s12 }
   0x8   :  { %v27_v4 = vmul.f32 %v25_v2, %v25_v2  ;;  %v28_v5 = vmul.f32 %v26_v3, %v26_v3 }
   0xa   :  { %v50_v6 = vadd.f32 -1.4551915e-11, %v27_v4  ;;  %v51_v7 = vadd.f32 -1.4551915e-11, %v28_v5 }
   0xc   :  { %31 = vst [vmem:[#allocation5] sm:$0xff] %v50_v6 }
   0xd   :  { %32 = vst [vmem:[#allocation5 + $0x8] sm:$0xff] %v51_v7 }
   0xe   :  { %43 = dma.vmem_to_hbm [thread:$0]  %s39_s12, 256, %s41_s15, [#allocation4]  }
   0xf   :  { %104 = dma.done.wait [#allocation4], 256  }
  0x10   :  { %105 = vsyncadd [#allocation4], 4294967040 }
  0x11   :  { %48 = vsyncpa [#allocation3], 1 }
  0x12   :  { %49 = vsyncpa [#allocation4], 1 }

</bundles_post_ra>
